<compile_context>
chip_gen: v7x
topology: tpu7x:2x2x1
jax: 0.10.0
libtpu: 0.0.40
codegen_flags: <defaults>
</compile_context>

<pallas_src>
import functools
import math

import jax
import jax.numpy as jnp
from jax.experimental import pallas as pl
from jax.experimental.pallas import tpu as pltpu

LN_EPS = 1e-5


# ----------------------------- Pallas kernels -----------------------------
def _patch_embed_kernel(p_ref, w_ref, b_ref, o_ref):
    # (tile_m, K)bf16 @ (K, E_pad)bf16 -> f32 accumulate, + bias, lane-dense store.
    y = jnp.dot(p_ref[...], w_ref[...], preferred_element_type=jnp.float32)
    o_ref[...] = (y + b_ref[...]).astype(o_ref.dtype)


def _patch_embed_ln_kernel(p_ref, w_ref, b_ref, g_ref, be_ref, o_ref, *, e_real):
    # GEMM + bias + fused LayerNorm over the real embed_dim.
    y = jnp.dot(p_ref[...], w_ref[...], preferred_element_type=jnp.float32) + b_ref[...]
    # Padded columns (>= e_real) are exactly zero (zero weight/bias columns), so
    # plain lane sums over the padded width equal sums over the real embed_dim.
    # Two independent reductions (sum and sum-of-squares) instead of the
    # dependent (y - mu)^2 chain; divide by the real E, not the padded width.
    inv_e = 1.0 / float(e_real)
    mu = jnp.sum(y, axis=-1, keepdims=True) * inv_e
    ms = jnp.sum(y * y, axis=-1, keepdims=True) * inv_e
    var = ms - mu * mu
    yn = (y - mu) * jax.lax.rsqrt(var + LN_EPS)          # rsqrt -> EUP slot
    # gamma/beta are zero-padded, so padded output columns stay exactly zero.
    o_ref[...] = (yn * g_ref[...] + be_ref[...]).astype(o_ref.dtype)


# ------------------------------ tiling helpers -----------------------------
def _pick_tile_m(rows):
    # Power-of-two row tile:
    #  * capped at 512 so double-buffered in/out tiles fit v5e's 16 MiB default
    #    scoped VMEM (and v7x's 64 MiB physical VMEM) even at ViT-scale K/E,
    #  * at most rows // 2 so the "parallel" grid axis has >= 2 steps and v7x's
    #    second TensorCore is not idle (v5e/v6e unaffected),
    #  * at least 8 (sublane alignment); caller pads rows up to a tile multiple.
    t = 512
    while t > 8 and t * 2 > rows:
        t //= 2
    return t


def _patch_embed_gemm(patches, w_t, bias, gamma=None, beta=None, *, e_real):
    rows, k = patches.shape
    e_pad = w_t.shape[1]
    tile_m = _pick_tile_m(rows)
    n_steps = pl.cdiv(rows, tile_m)
    rows_pad = n_steps * tile_m
    if rows_pad != rows:
        # Keep every tile fully sublane-aligned; padded rows are sliced off by
        # the caller (they only ever produce throwaway bias/LN values).
        patches = jnp.pad(patches, ((0, rows_pad - rows), (0, 0)))

    row = lambda i: (i, 0)
    rep = lambda i: (0, 0)

    in_specs = [
        pl.BlockSpec((tile_m, k), row),    # im2col patch rows (bf16)
        pl.BlockSpec((k, e_pad), rep),     # flattened conv weight, resident (bf16)
        pl.BlockSpec((1, e_pad), rep),     # conv bias (f32)
    ]
    args = [patches, w_t, bias]
    if gamma is not None:
        assert beta is not None
        kernel = functools.partial(_patch_embed_ln_kernel, e_real=e_real)
        in_specs += [pl.BlockSpec((1, e_pad), rep), pl.BlockSpec((1, e_pad), rep)]
        args += [gamma, beta]
    else:
        kernel = _patch_embed_kernel

    # Explicit VMEM budget (v5e default scoped limit is only 16 MiB): double
    # buffered patch + output tiles, resident weight, broadcast vectors.
    in_bytes = patches.dtype.itemsize
    est = (2 * tile_m * k * in_bytes
           + 2 * tile_m * e_pad * 4
           + 2 * k * e_pad * in_bytes
           + 8 * e_pad * 4)
    vmem_limit = int(min(max(4 * est, 16 * 1024 * 1024), 64 * 1024 * 1024))

    return pl.pallas_call(
        kernel,
        out_shape=jax.ShapeDtypeStruct((rows_pad, e_pad), jnp.float32),
        grid=(n_steps,),
        in_specs=in_specs,
        out_specs=pl.BlockSpec((tile_m, e_pad), row),
        compiler_params=pltpu.CompilerParams(
            dimension_semantics=("parallel",),
            # Let XLA fuse the im2col reshape/transpose/cast producer into the
            # kernel's patches operand -> no materialized HBM round trip.
            allow_input_fusion=[True] + [False] * (len(args) - 1),
            vmem_limit_bytes=vmem_limit,
        ),
    )(*args)


# ------------------------------ forward pass ------------------------------
def patch_embed_forward(x, w_conv, b_conv, gamma=None, beta=None, *, patch_size):
    """PatchEmbed.forward: Conv2d(k=s=patch) -> flatten(2).transpose(1,2) [-> LayerNorm]."""
    B, C, H, W = x.shape
    p = patch_size
    assert H % p == 0 and W % p == 0, "Input image size doesn't match"
    Hp, Wp = H // p, W // p
    E = w_conv.shape[0]
    K = C * p * p
    e_pad = ((E + 127) // 128) * 128     # lane-dense output columns (e.g. 96 -> 128)

    # im2col in (c, kh, kw) order to match the OIHW weight flatten. This is a
    # pure layout op; allow_input_fusion above lets it fuse into the kernel's
    # input DMA. Cast to bf16 halves input-side HBM bytes (f32 accumulate).
    xp = x.reshape(B, C, Hp, p, Wp, p)
    xp = jnp.transpose(xp, (0, 2, 4, 1, 3, 5))           # (B, Hp, Wp, C, p, p)
    patches = xp.reshape(B * Hp * Wp, K).astype(jnp.bfloat16)

    # One-time weight prep: flatten, transpose, zero-pad E to e_pad, cast bf16.
    w_t = jnp.pad(w_conv.reshape(E, K).T, ((0, 0), (0, e_pad - E))).astype(jnp.bfloat16)
    bias = jnp.pad(b_conv.reshape(1, E), ((0, 0), (0, e_pad - E))).astype(jnp.float32)
    g = be = None
    if gamma is not None:
        # Zero-padded gamma/beta keep padded output columns exactly zero; the
        # in-kernel LN divides by the real E so padding never leaks into stats.
        g = jnp.pad(gamma.reshape(1, E), ((0, 0), (0, e_pad - E))).astype(jnp.float32)
        be = jnp.pad(beta.reshape(1, E), ((0, 0), (0, e_pad - E))).astype(jnp.float32)

    out = _patch_embed_gemm(patches, w_t, bias, g, be, e_real=E)
    out = out[: B * Hp * Wp, :E]
    return out.reshape(B, Hp * Wp, E)


# --------------------------- pure-JAX reference ---------------------------
def _reference(x, w_conv, b_conv, patch_size, gamma=None, beta=None):
    y = jax.lax.conv_general_dilated(
        x, w_conv, window_strides=(patch_size, patch_size), padding="VALID",
        dimension_numbers=("NCHW", "OIHW", "NCHW"),
        precision=jax.lax.Precision.HIGHEST)
    B, E, Hp, Wp = y.shape
    y = y + b_conv.reshape(1, E, 1, 1)
    y = y.reshape(B, E, Hp * Wp).transpose(0, 2, 1)      # flatten(2).transpose(1,2)
    if gamma is not None:
        mu = jnp.mean(y, axis=-1, keepdims=True)
        var = jnp.var(y, axis=-1, keepdims=True)
        y = (y - mu) / jnp.sqrt(var + LN_EPS) * gamma.reshape(1, 1, E) + beta.reshape(1, 1, E)
    return y


if __name__ == "__main__":
    # Module defaults (patch_size=4, in_chans=3, embed_dim=96, norm_layer=None)
    # at a small image size. E=96 deliberately exercises the lane-padding path.
    B, C_IN, IMG, P, E = 2, 3, 32, 4, 96
    key = jax.random.PRNGKey(0)
    kx, kw, kb = jax.random.split(key, 3)

    x = jax.random.normal(kx, (B, C_IN, IMG, IMG), jnp.float32)
    fan_in = C_IN * P * P
    bound = 1.0 / math.sqrt(fan_in)                      # PyTorch Conv2d default init range
    w_conv = jax.random.uniform(kw, (E, C_IN, P, P), jnp.float32, -bound, bound)
    b_conv = jax.random.uniform(kb, (E,), jnp.float32, -bound, bound)

    # bf16-rounded copies of what the kernel's MXU actually sees, for a tight
    # check that catches layout/ordering regressions; plus a loose check
    # against the pure-f32 reference to bound the bf16 quantization error.
    x_r = x.astype(jnp.bfloat16).astype(jnp.float32)
    w_r = w_conv.astype(jnp.bfloat16).astype(jnp.float32)

    # ---- default config: norm_layer=None ----
    fwd = jax.jit(lambda x_, w_, b_: patch_embed_forward(x_, w_, b_, patch_size=P))
    y = jax.block_until_ready(fwd(x, w_conv, b_conv))
    assert y.shape == (B, (IMG // P) ** 2, E) and y.dtype == jnp.float32
    assert bool(jnp.all(jnp.isfinite(y)))
    y_tight = _reference(x_r, w_r, b_conv, P)
    assert float(jnp.max(jnp.abs(y - y_tight))) < 1e-4, "tight (bf16-rounded) check failed"
    y_f32 = _reference(x, w_conv, b_conv, P)
    assert float(jnp.max(jnp.abs(y - y_f32))) < 3e-2, "loose (f32) check failed"

    # ---- norm_layer=nn.LayerNorm path (fused into the same Pallas kernel) ----
    kg, kbe = jax.random.split(jax.random.PRNGKey(1))
    gamma = 1.0 + 0.1 * jax.random.normal(kg, (E,), jnp.float32)
    beta = 0.1 * jax.random.normal(kbe, (E,), jnp.float32)
    fwd_ln = jax.jit(
        lambda x_, w_, b_, g_, bb_: patch_embed_forward(x_, w_, b_, g_, bb_, patch_size=P))
    y2 = jax.block_until_ready(fwd_ln(x, w_conv, b_conv, gamma, beta))
    assert y2.shape == (B, (IMG // P) ** 2, E)
    assert bool(jnp.all(jnp.isfinite(y2)))
    y2_tight = _reference(x_r, w_r, b_conv, P, gamma, beta)
    assert float(jnp.max(jnp.abs(y2 - y2_tight))) < 5e-4, "tight LN check failed"
    y2_f32 = _reference(x, w_conv, b_conv, P, gamma, beta)
    assert float(jnp.max(jnp.abs(y2 - y2_f32))) < 5e-2, "loose LN check failed"

    print("KERNEL_OK")
</pallas_src>

<mosaic_0001>
module attributes {stable_mosaic.version = 11 : i64} {
  func.func @_patch_embed_kernel(%arg0: i32, %arg1: memref<64x48xbf16, #tpu.memory_space<vmem>>, %arg2: memref<48x128xbf16, #tpu.memory_space<vmem>>, %arg3: memref<1x128xf32, #tpu.memory_space<vmem>>, %arg4: memref<64x128xf32, #tpu.memory_space<vmem>>) attributes {dimension_semantics = [#tpu.dimension_semantics<parallel>], iteration_bounds = array<i64: 2>, scalar_prefetch = 0 : i64, scratch_operands = 0 : i64, tpu.core_type = #tpu.core_type<tc>, window_params = [{transform_indices = @transform_0, window_bounds = array<i64: 64, 48>}, {pipeline_mode = #tpu.pipeline_mode<synchronous>, transform_indices = @transform_1, window_bounds = array<i64: 48, 128>}, {pipeline_mode = #tpu.pipeline_mode<synchronous>, transform_indices = @transform_2, window_bounds = array<i64: 1, 128>}, {transform_indices = @transform_3, window_bounds = array<i64: 64, 128>}]} {
    %c0 = arith.constant 0 : index
    %c0_0 = arith.constant 0 : index
    %0 = vector.load %arg1[%c0, %c0_0] : memref<64x48xbf16, #tpu.memory_space<vmem>>, vector<64x48xbf16>
    %c0_1 = arith.constant 0 : index
    %c0_2 = arith.constant 0 : index
    %1 = vector.load %arg2[%c0_1, %c0_2] : memref<48x128xbf16, #tpu.memory_space<vmem>>, vector<48x128xbf16>
    %cst = arith.constant dense<0.000000e+00> : vector<64x128xf32>
    %2 = tpu.matmul %0, %1, %cst {dimension_numbers = #tpu.dot_dimension_numbers<[1], [0], [0], [1], [0, 0, 1, 1], [], []>} : vector<64x48xbf16>, vector<48x128xbf16>, vector<64x128xf32> -> vector<64x128xf32>
    %c0_3 = arith.constant 0 : index
    %c0_4 = arith.constant 0 : index
    %3 = vector.load %arg3[%c0_3, %c0_4] : memref<1x128xf32, #tpu.memory_space<vmem>>, vector<1x128xf32>
    %4 = vector.broadcast %3 : vector<1x128xf32> to vector<64x128xf32>
    %5 = arith.addf %2, %4 : vector<64x128xf32>
    %c0_5 = arith.constant 0 : index
    %c0_6 = arith.constant 0 : index
    %6 = vector.load %arg4[%c0_5, %c0_6] : memref<64x128xf32, #tpu.memory_space<vmem>>, vector<64x128xf32>
    tpu.vector_store %arg4[%c0_5, %c0_6], %5 {strides = array<i32>} : memref<64x128xf32, #tpu.memory_space<vmem>>, vector<64x128xf32>,
    return
  }
  func.func @transform_0(%arg0: i32) -> (i32, i32) {
    %c0_i32 = arith.constant 0 : i32
    %c0_i32_0 = arith.constant 0 : i32
    return %arg0, %c0_i32 : i32, i32
  }
  func.func @transform_1(%arg0: i32) -> (i32, i32) {
    %c0_i32 = arith.constant 0 : i32
    %c0_i32_0 = arith.constant 0 : i32
    %c0_i32_1 = arith.constant 0 : i32
    return %c0_i32, %c0_i32_0 : i32, i32
  }
  func.func @transform_2(%arg0: i32) -> (i32, i32) {
    %c0_i32 = arith.constant 0 : i32
    %c0_i32_0 = arith.constant 0 : i32
    %c0_i32_1 = arith.constant 0 : i32
    return %c0_i32, %c0_i32_0 : i32, i32
  }
  func.func @transform_3(%arg0: i32) -> (i32, i32) {
    %c0_i32 = arith.constant 0 : i32
    %c0_i32_0 = arith.constant 0 : i32
    return %arg0, %c0_i32 : i32, i32
  }
}

</mosaic_0001>

<bundles_post_ra>
// kernel: _lambda_.1
= control target key start
LH: loop header
LB: loop body
LE: loop exit
PB: predicated region body
PF: predicated region fallthrough
CT: control target
= control target key end

     0   :  { %8 = vsyncpa [#allocation3], 0  ;;  %s699_s0 = inlined_call_operand.vmem [shape: bf16[128,48], index: 0, kind: input, shape index: {}]   ;;  %s700_s1 = inlined_call_operand.vmem [shape: bf16[48,128], index: 1, kind: input, shape index: {}]   ;;  %s701_s2 = inlined_call_operand.vmem [shape: f32[1,128], index: 2, kind: input, shape index: {}]   ;;  %s702_s3 = inlined_call_operand.hbm [shape: f32[128,128], index: 3, kind: output, shape index: {}]  }
   0x1   :  { %10 = vsyncpa [#allocation3 + $0x1], 0  ;;  %s581_s12 = smov 0   ;;  %s583_s13 = smov 0  }
   0x2   :  { %s585_s14 = smov 0   ;;  %s587_s15 = smov 0  }
   0x3 LB: > { %s602_s16 = sadd.s32 4294967295, %s556_s15   ;;  %s394_s17 = sadd.s32 4294967294, %s556_s15   ;;  %s556_s15 = sphi %s587_s15, %s708_s15   ;;  %s552_s14 = sphi %s585_s14, %s707_s14   ;;  %s548_s13 = sphi %s583_s13, %s706_s13   ;;  %s544_s12 = sphi %s581_s12, %s705_s12  }
   0x4   : > { %s606_s18 = sadd.s32 1, %s556_s15   ;;  %s91_s19 = sadd.s32 1, %s552_s14 }
   0x5   : > { %s88_s20 = ssub.s32 %s556_s15, %s606_s18  ;;  %p101_p0 = scmp.ne.s32.totalorder %s552_s14, %s548_s13 }
   0x6   : > { %p89_p1 = scmp.eq.s32.totalorder %s88_s20, 0  ;;  %p102_p2 = scmp.eq.s32.totalorder %s602_s16, 1 }
   0x7   : > { %p107_p3 = scmp.ne.s32.totalorder %s548_s13, %s544_s12  ;;  %p108_p4 = scmp.eq.s32.totalorder %s394_s17, 1 }
   0x8   : > { %s617_s21 = scalar_select %p89_p1, %s552_s14, %s91_s19  }
   0x9   : > { %p619_p5 = por %p102_p2, %p101_p0  ;;  %p623_p6 = por %p108_p4, %p107_p3 }
   0xa   : > { %p397_p7 = scmp.ge.s32.totalorder %s556_s15, 1  ;;  %p141_p8 = scmp.lt.s32.totalorder %s556_s15, 3 }
   0xc   : > { %p142_p9 = pnand %p397_p7, %p141_p8 }
   0xd   : > { %v487_v0 = vld [vmem:[%s700_s1] sm:$0xff] (!%p142_p9)   ;;  %s399_s26 = sshll.u32 (!%p142_p9), %s602_s16, 3  ;;  %v488_v1 = vld [vmem:[%s700_s1 + $0x8] sm:$0xff] (!%p142_p9)   ;;  %v489_v2 = vld [vmem:[%s700_s1 + $0x10] sm:$0xff] (!%p142_p9)   ;;  %vm232_vm0 = vcmask (!%p142_p9), 392192   ;;  %s162_s8 = sand.u32 (!%p142_p9), 1, %s548_s13  }
   0xe   : > { %145 = sbr.rel (%p142_p9) target bundleno = 258 (0x102), region = 32  ;;  %p166_p10 = scmp.lt.s32.totalorder (!%p142_p9), %s399_s26, 15  ;;  %426 = vmatprep.subr.bf16.mxu0 (!%p142_p9), %v487_v0  ;;  %440 = vmatprep.subr.bf16.mxu1 (!%p142_p9), %v487_v0  ;;  %v401_v7 = vld [vmem:[%s701_s2] ss:$0 sm:$0xff] (!%p142_p9) }
   0xf   : > { %427 = vmatpush3.bf16.msra.mxu0 (!%p142_p9), %v487_v0  ;;  %443 = vmatpush3.bf16.msra.mxu1 (!%p142_p9), %v487_v0  ;;  %s398_s9 = sshll.u32 (!%p142_p9), %s162_s8, 6  ;;  %s418_s17 = sshll.u32 (!%p142_p9), %s602_s16, 10 }
  0x10   : > { %428 = vmatprep.subr.bf16.mxu0 (!%p142_p9), %v488_v1  ;;  %441 = vmatprep.subr.bf16.mxu1 (!%p142_p9), %v488_v1  ;;  %s164_s19 = scalar_lea.vmem (!%p142_p9), [#allocation2], %s398_s9  ;;  %s652_s25 = scalar_lea.hbm (!%p142_p9), %s702_s3, %s418_s17 }
  0x11   : > { %s332_s20 = sshll.u32 (!%p142_p9), %s164_s19, 4  ;;  %s558_s28 = smov (!%p142_p9), [#allocation2]   ;;  %s654_s20 = int_to_ptr.vmem [resolvable:$true] %s332_s20 }
  0x12   : > { %s494_s27 = scalar_lea.vmem (!%p142_p9), %s654_s20, 1024  ;;  %s498_s29 = sshll.u32 (!%p142_p9), %s558_s28, 4  ;;  %s499_s29 = int_to_ptr.vmem [resolvable:$false] %s498_s29 }
  0x13   : > { %429 = vmatpush3.bf16.msra.mxu0 (!%p142_p9), %v488_v1  ;;  %444 = vmatpush3.bf16.msra.mxu1 (!%p142_p9), %v488_v1  ;;  %p495_p11 = scmp.ne.s32.totalorder (!%p142_p9), %s654_s20, %s494_s27  ;;  %s500_s30 = scalar_lea.vmem (!%p142_p9), %s499_s29, 2048 }
  0x14   : > { %430 = vmatprep.subr.bf16.mxu0 (!%p142_p9), %v489_v2  ;;  %442 = vmatprep.subr.bf16.mxu1 (!%p142_p9), %v489_v2  ;;  %p501_p0 = scmp.lt.s32.totalorder (!%p142_p9), %s654_s20, %s499_s29  ;;  %p502_p1 = scmp.lt.s32.totalorder (!%p142_p9), %s500_s30, %s494_s27 }
  0x15   : > { %s710_s26 = smov (!%p166_p10, %s399_s26), 15  ;;  %p496_p12 = pnand %p495_p11, %p619_p5 }
  0x16   : > { %s400_s4 = sshll.u32 %s710_s26, 2  ;;  %s658_s26 = scalar_lea.sflag [#allocation3], %s162_s8 }
  0x17   : > { %s169_s7 = scalar_lea.vmem %s699_s0, %s400_s4  ;;  %431 = vmatpush3.bf16.msra.mxu0 %v489_v2  ;;  %445 = vmatpush3.bf16.msra.mxu1 %v489_v2  ;;  %p497_p13 = pneg %p496_p12 }
  0x18   : > { %v490_v3 = vld [vmem:[%s169_s7] sm:$0xff]   ;;  %v491_v4 = vld [vmem:[%s169_s7 + $0x10] sm:$0xff]   ;;  %v492_v5 = vld [vmem:[%s169_s7 + $0x8] sm:$0xff]   ;;  %p503_p2 = por %p502_p1, %p501_p0 }
  0x19   : > { %432 = vmatprep.mubr.msk.bf16.mxu0 %vm232_vm0, %v490_v3  ;;  %436 = vmatprep.mubr.msk.bf16.mxu1 %vm232_vm0, %v491_v4  ;;  %v493_v6 = vld [vmem:[%s169_s7 + $0x18] sm:$0xff]  }
  0x1a   : > { %433 = vmatmul.mubr.msk.bf16.vlgmr.msra.gmra.mrb[0].mxu0 %vm232_vm0, %v492_v5  ;;  %437 = vmatmul.mubr.msk.bf16.vlgmr.msra.gmra.mrb[0].mxu1 %vm232_vm0, %v493_v6  ;;  %p504_p3 = pnand %p503_p2, %p497_p13 }
  0xed   : > { %v434_v8 = vpop.f32.mrb[0].mxu0  ;;  %v438_v9 = vpop.f32.mrb[0].mxu1 }
  0xee   : > { %v288_v10 = vadd.f32 %v434_v8, %v401_v7  ;;  %v304_v11 = vadd.f32 %v438_v9, %v401_v7  ;;  %v279_v12 = vpop.f32.mrb[1].mxu0  ;;  %v295_v13 = vpop.f32.mrb[1].mxu1 }
  0xef   : > { %v280_v14 = vadd.f32 %v401_v7, %v279_v12  ;;  %v296_v15 = vadd.f32 %v401_v7, %v295_v13  ;;  %v435_v16 = vpop.f32.mrb[2].mxu0  ;;  %v439_v17 = vpop.f32.mrb[2].mxu1 }
  0xf0   : > { %312 = vst [vmem:[%s164_s19 + $0x10] sm:$0xff] %v288_v10  ;;  %316 = vst [vmem:[%s164_s19 + $0x30] sm:$0xff] %v304_v11  ;;  %v291_v18 = vadd.f32 %v435_v16, %v401_v7  ;;  %v307_v19 = vadd.f32 %v439_v17, %v401_v7  ;;  %v282_v20 = vpop.f32.mrb[3].mxu0  ;;  %v298_v21 = vpop.f32.mrb[3].mxu1 }
  0xf1   : > { %310 = vst [vmem:[%s164_s19] sm:$0xff] %v280_v14  ;;  %314 = vst [vmem:[%s164_s19 + $0x20] sm:$0xff] %v296_v15  ;;  %v283_v22 = vadd.f32 %v401_v7, %v282_v20  ;;  %v299_v23 = vadd.f32 %v401_v7, %v298_v21 }
  0xf2   : > { %313 = vst [vmem:[%s164_s19 + $0x18] sm:$0xff] %v291_v18  ;;  %317 = vst [vmem:[%s164_s19 + $0x38] sm:$0xff] %v307_v19 }
  0xf3   : > { %311 = vst [vmem:[%s164_s19 + $0x8] sm:$0xff] %v283_v22  ;;  %315 = vst [vmem:[%s164_s19 + $0x28] sm:$0xff] %v299_v23 }
  0xf4   : > { %507 = shalt.err (!%p504_p3)
}
  0xf5   : > { %s508_s4 = scalar_lea.hbm %s652_s25, 1024  ;;  %s512_s7 = scalar_lea.hbm %s702_s3, 2048 }
  0xf6   : > { %p509_p4 = scmp.ne.s32.totalorder %s652_s25, %s508_s4  ;;  %p513_p9 = scmp.lt.u32.totalorder %s652_s25, %s702_s3 }
  0xf7   : > { %p514_p10 = scmp.lt.u32.totalorder %s512_s7, %s508_s4  ;;  %p516_p12 = scmp.lt.u32.totalorder %s508_s4, %s652_s25 }
  0xf8   : > { %p510_p7 = pnand %p509_p4, %p619_p5 }
  0xf9   : > { %p515_p11 = por %p514_p10, %p513_p9 }
  0xfa   : > { %p511_p8 = pneg %p510_p7 }
  0xfb   : > { %p517_p13 = por %p516_p12, %p515_p11 }
  0xfd   : > { %p518_p0 = pnand %p517_p13, %p511_p8 }
  0xff   : > { %521 = shalt.err (!%p518_p0)
}
 0x100   : > { %s559_s10 = smov 128   ;;  %s560_s11 = smov 8  }
 0x101   : > { %446 = dma.vmem_to_hbm [thread:$0]  (%p619_p5), %s654_s20, 1024, %s652_s25, %s658_s26, %s559_s10, %s559_s10, %s560_s11  }
 0x102 PF: > { %p452_p1 = scmp.ge.s32.totalorder %s556_s15, 2  ;;  %s347_s17 = sand.u32 1, %s544_s12  }
 0x103   : > { %s348_s19 = scalar_lea.sflag [#allocation3], %s347_s17 }
 0x104   : > { %p449_p2 = pnand %p452_p1, %p623_p6 }
 0x106   : > { %539 = dma.done.wait (!%p449_p2), %s348_s19, 1024  }
 0x107   : > { %541 = vsyncadd (!%p449_p2), %s348_s19, 4294966272  ;;  %p13_p3 = scmp.ge.s32.totalorder %s606_s18, 4   ;;  %s705_s12 = smov %s548_s13 }
 0x108   : > { %s706_s13 = smov %s552_s14  ;;  %s707_s14 = smov %s617_s21 }
 0x109   : > { %s708_s15 = smov %s606_s18  ;;  %15 = sbr.rel (!%p13_p3) target bundleno = 3 (0x3), region = 67 }
 0x110   :  { %353 = vsyncpa [#allocation3], 1 }
 0x111   :  { %355 = vsyncpa [#allocation3 + $0x1], 1 }

</bundles_post_ra>
